<compile_context>
chip_gen: v5e
topology: v5e:2x2
jax: 0.10.0
libtpu: 0.0.40
codegen_flags: <defaults>
</compile_context>

<pallas_src>
import numpy as np
import jax
import jax.numpy as jnp
from jax import lax
from jax.experimental import pallas as pl
from jax.experimental.pallas import tpu as pltpu

_IMAGENET_MEAN = np.array([0.485, 0.456, 0.406], np.float32)
_IMAGENET_STD = np.array([0.229, 0.224, 0.225], np.float32)
_PAD_VALUE = 114.0  # resize_image pads with RGB (114, 114, 114)


def _round_up(x, m):
    return ((x + m - 1) // m) * m


def _bilinear_matrix(out_size, in_size):
    """Standard (half-pixel-center) bilinear interpolation matrix (out, in)."""
    # TODO(synk): PIL BILINEAR applies an antialiasing filter when downscaling;
    # this is plain bilinear interpolation (numerically different on downscale).
    i = np.arange(out_size)
    s = (i + 0.5) * in_size / out_size - 0.5
    f = np.floor(s).astype(np.int64)
    t = (s - f).astype(np.float32)
    f0 = np.clip(f, 0, in_size - 1)
    f1 = np.clip(f + 1, 0, in_size - 1)
    W = np.zeros((out_size, in_size), np.float32)
    W[i, f0] += (1.0 - t)
    W[i, f1] += t
    return W


def _vmem_limit_bytes():
    """Capacity-derived VMEM request with ~20% headroom (no hard 64 MiB cap)."""
    try:
        cap = int(pltpu.get_tpu_info().vmem_capacity_bytes)
    except Exception:
        cap = 64 << 20  # conservative fallback (v7x physical per-TC size)
    return max(32 << 20, int(cap * 0.8))


def _make_fused_call(*, Hc_pad, Wc_pad, H_out_pad, W_out_pad, TH, TW, n_h, n_w,
                     Hr, Wr, Npad, needs_mask, offset_x, offset_y, new_w, new_h,
                     flip, scale, vmem_limit):
    """Tiled kernel: channel-fused resize + pad + normalize, and the bbox path."""
    inv_std = [float(v) for v in (1.0 / _IMAGENET_STD)]
    bias = [float(v) for v in (-_IMAGENET_MEAN / _IMAGENET_STD)]
    pad_norm = [float((_PAD_VALUE / 255.0) * a + b) for a, b in zip(inv_std, bias)]
    ox, oy = float(offset_x), float(offset_y)
    nw, nh = float(new_w), float(new_h)
    sc = float(scale)

    def kernel(img_ref, wy_ref, wxt_ref, bb_ref, out_img_ref, out_bb_ref, tmp_ref):
        i = pl.program_id(0)   # H_out row tile  (parallel)
        j = pl.program_id(1)   # W_out lane tile (arbitrary: tmp scratch reuse)

        # ---- matmul 1, channel-fused: recompute only when a new row tile starts.
        @pl.when(j == 0)
        def _():
            tmp_ref[...] = jnp.dot(
                wy_ref[...], img_ref[...],
                preferred_element_type=jnp.float32).astype(jnp.bfloat16)

        # ---- pad/valid mask from broadcastable row/col compares (no iota slabs).
        if needs_mask:
            row_ok = (lax.broadcasted_iota(jnp.int32, (TH, 1), 0) + i * TH) < Hr
            col_ok = (lax.broadcasted_iota(jnp.int32, (1, TW), 1) + j * TW) < Wr
            valid = jnp.logical_and(row_ok, col_ok)

        # ---- matmul 2 per channel + fused normalize/pad epilogue.
        wxt = wxt_ref[...]                              # (Wc_pad, TW) bf16
        for c in range(3):
            res = jnp.dot(tmp_ref[:, c * Wc_pad:(c + 1) * Wc_pad], wxt,
                          preferred_element_type=jnp.float32)
            norm = res * inv_std[c] + bias[c]
            if needs_mask:
                norm = jnp.where(valid, norm, pad_norm[c])
            out_img_ref[c] = norm

        # ---- bbox path: tiny VPU work, done once per row tile; output block is
        # indexed by the row tile so it is never revisited along the parallel axis.
        @pl.when(j == 0)
        def _():
            bb = bb_ref[...]                            # (8, Npad): rows 0..3 = coords
            x1 = bb[0:1, :] - ox
            y1 = bb[1:2, :] - oy
            x2 = bb[2:3, :] - ox
            y2 = bb[3:4, :] - oy
            inside = jnp.logical_not(
                ((x1 < 0.0) & (x2 < 0.0)) | ((x1 > nw) & (x2 > nw))
                | ((y1 < 0.0) & (y2 < 0.0)) | ((y1 > nh) & (y2 > nh)))
            x1c = jnp.maximum(x1, 0.0)
            y1c = jnp.maximum(y1, 0.0)
            x2c = jnp.minimum(x2, nw)
            y2c = jnp.minimum(y2, nh)
            if flip:                                    # static -> folded, no select
                x1o, x2o = nw - x2c, nw - x1c
            else:
                x1o, x2o = x1c, x2c
            zero = jnp.zeros_like(x1)
            out_bb_ref[0] = jnp.concatenate(
                [x1o * sc, y1c * sc, x2o * sc, y2c * sc,
                 inside.astype(jnp.float32), zero, zero, zero], axis=0)

    grid_spec = pltpu.PrefetchScalarGridSpec(
        num_scalar_prefetch=0,
        grid=(n_h, n_w),
        in_specs=[
            # channel-fused bf16 crop, resident (fetched once: constant index map)
            pl.BlockSpec((Hc_pad, 3 * Wc_pad), lambda i, j: (0, 0)),
            # row-interp weights, tiled over output rows
            pl.BlockSpec((TH, Hc_pad), lambda i, j: (i, 0)),
            # col-interp weights, tiled over output lanes
            # TODO(synk): on v7x, pipeline_mode=pl.Buffered(3) here if DMA is exposed.
            pl.BlockSpec((Wc_pad, TW), lambda i, j: (0, j)),
            # bboxes, resident
            pl.BlockSpec((8, Npad), lambda i, j: (0, 0)),
        ],
        out_specs=(
            pl.BlockSpec((3, TH, TW), lambda i, j: (0, i, j)),
            pl.BlockSpec((1, 8, Npad), lambda i, j: (i, 0, 0)),
        ),
        scratch_shapes=[pltpu.VMEM((TH, 3 * Wc_pad), jnp.bfloat16)],
    )

    return pl.pallas_call(
        kernel,
        out_shape=(
            # TODO(synk): emit bf16 here if the downstream network consumes bf16
            # (halves output HBM writeback); f32 kept to match the module.
            jax.ShapeDtypeStruct((3, H_out_pad, W_out_pad), jnp.float32),
            jax.ShapeDtypeStruct((n_h, 8, Npad), jnp.float32),
        ),
        grid_spec=grid_spec,
        compiler_params=pltpu.CompilerParams(
            dimension_semantics=("parallel", "arbitrary"),
            vmem_limit_bytes=vmem_limit),
    )


def detection_training_transform_forward(image, bboxes, image_size, *,
                                          ratio, offset_x, offset_y, flip):
    """image: (3, H, W) float32 in [0, 255]; bboxes: (N, 4) float32 [x1,y1,x2,y2].
    Returns (normalized (3,H_out,W_out) f32, transformed bboxes (N,4) f32,
    inside-crop mask (N,) bool)."""
    # TODO(synk): the PIL photometric augmentations (ColorJitter, RandomGrayscale,
    # RandomSharpnessChange, RandomAutocontrast, RandomEqualize, RandomPosterize)
    # have no clean Pallas equivalent; they are skipped here.
    _, H0, W0 = image.shape
    N = int(bboxes.shape[0])

    # ---- _random_crop geometry (host-side, static shapes) ----
    new_w = int(ratio * W0)
    new_h = int(ratio * H0)

    # ---- resize_image geometry ----
    H_out, W_out = image_size
    scale = min(H_out / new_h, W_out / new_w)
    Hr = int(new_h * scale)
    Wr = int(new_w * scale)

    # ---- padded tile sizes: unmasked matmuls, lane-dense stores, tiled pipeline ----
    Hc_pad = _round_up(new_h, 16)                 # bf16 sublane packing = 16 rows
    Wc_pad = _round_up(new_w, 128)
    H_out_pad = _round_up(H_out, 8)
    TH = min(256, H_out_pad)                      # row tile (parallel axis)
    H_out_pad = _round_up(H_out_pad, TH)
    W_out_pad = _round_up(W_out, 128)
    TW = min(512, W_out_pad)                      # lane tile; 512 keeps v6e/v7x MXU full-width
    W_out_pad = _round_up(W_out_pad, TW)
    n_h = H_out_pad // TH
    n_w = W_out_pad // TW
    Npad = max(_round_up(N, 128), 128)
    needs_mask = (Hr < H_out_pad) or (Wr < W_out_pad)

    # ---- cropped image: cast to bf16 BEFORE padding, channels stacked along lanes ----
    cropped = lax.slice(image, (0, offset_y, offset_x),
                        (3, offset_y + new_h, offset_x + new_w)).astype(jnp.bfloat16)
    img_pad = jnp.pad(cropped, ((0, 0), (0, Hc_pad - new_h), (0, Wc_pad - new_w)))
    img_all = jnp.transpose(img_pad, (1, 0, 2)).reshape(Hc_pad, 3 * Wc_pad)

    # ---- interpolation matrices (zero-padded; 1/255 folded into wy, flip into wxt) ----
    # TODO(synk): with a random ratio per sample this recompiles and re-ships the
    # weights every call; a training loop should bucket crop sizes and cache
    # device-resident wy/wxt per bucket.
    wy_full = np.zeros((H_out_pad, Hc_pad), np.float32)
    wy_full[:Hr, :new_h] = _bilinear_matrix(Hr, new_h) * (1.0 / 255.0)
    wx = _bilinear_matrix(Wr, new_w)
    if flip:
        wx = wx[:, ::-1]                          # hflip == column-reversed weights
    wxt_full = np.zeros((Wc_pad, W_out_pad), np.float32)
    wxt_full[:new_w, :Wr] = wx.T

    # ---- bboxes coordinate-major, padded to a dense (8, 128k) tile ----
    bb_pad = jnp.pad(jnp.asarray(bboxes, jnp.float32).T, ((0, 4), (0, Npad - N)))

    call = _make_fused_call(
        Hc_pad=Hc_pad, Wc_pad=Wc_pad, H_out_pad=H_out_pad, W_out_pad=W_out_pad,
        TH=TH, TW=TW, n_h=n_h, n_w=n_w, Hr=Hr, Wr=Wr, Npad=Npad,
        needs_mask=needs_mask, offset_x=offset_x, offset_y=offset_y,
        new_w=new_w, new_h=new_h, flip=flip, scale=scale,
        vmem_limit=_vmem_limit_bytes())
    out_img_pad, out_bb = call(img_all,
                               jnp.asarray(wy_full, jnp.bfloat16),
                               jnp.asarray(wxt_full, jnp.bfloat16),
                               bb_pad)

    normalized = out_img_pad
    if (H_out_pad, W_out_pad) != (H_out, W_out):
        # TODO(synk): this slice is an extra HBM pass; prefer (8,128)-aligned image_size.
        normalized = out_img_pad[:, :H_out, :W_out]
    out_bboxes = out_bb[0, 0:4, :N].T
    # TODO(synk): PyTorch drops boxes outside the crop (dynamic shape); here all
    # transformed boxes are returned alongside a boolean validity mask instead.
    mask = out_bb[0, 4, :N] > 0.5
    return normalized, out_bboxes, mask


if __name__ == "__main__":
    key = jax.random.PRNGKey(0)
    k_img, k_bb, k_ratio, k_ox, k_oy, k_flip = jax.random.split(key, 6)

    H0, W0, N = 40, 48, 8
    image = jax.random.uniform(k_img, (3, H0, W0), jnp.float32, 0.0, 255.0)

    u = jax.random.uniform(k_bb, (N, 4), jnp.float32)
    x1 = u[:, 0] * (W0 * 0.8)
    y1 = u[:, 1] * (H0 * 0.8)
    x2 = x1 + 4.0 + u[:, 2] * 12.0
    y2 = y1 + 4.0 + u[:, 3] * 12.0
    bboxes = jnp.stack([x1, y1, x2, y2], axis=1)

    # Deterministic stand-ins for the module's `random.*` calls.
    ratio = float(jax.random.uniform(k_ratio, (), jnp.float32, 0.5, 1.0))
    new_w = int(ratio * W0)
    new_h = int(ratio * H0)
    offset_x = int(jax.random.randint(k_ox, (), 0, max(1, W0 - new_w)))
    offset_y = int(jax.random.randint(k_oy, (), 0, max(1, H0 - new_h)))
    flip = bool(jax.random.uniform(k_flip, ()) < 0.5)

    # (8,128)-aligned output size -> no post-kernel slice pass.
    image_size = (64, 128)
    norm_img, out_bboxes, mask = detection_training_transform_forward(
        image, bboxes, image_size,
        ratio=ratio, offset_x=offset_x, offset_y=offset_y, flip=flip)

    jax.block_until_ready((norm_img, out_bboxes, mask))
    assert norm_img.shape == (3, image_size[0], image_size[1])
    assert norm_img.dtype == jnp.float32
    assert out_bboxes.shape == (N, 4)
    assert mask.shape == (N,) and mask.dtype == jnp.bool_
    assert bool(jnp.all(jnp.isfinite(norm_img)))
    print("KERNEL_OK")
</pallas_src>

<mosaic_0001>
module attributes {stable_mosaic.version = 11 : i64} {
  func.func @kernel(%arg0: i32, %arg1: i32, %arg2: memref<48x384xbf16, #tpu.memory_space<vmem>>, %arg3: memref<64x48xbf16, #tpu.memory_space<vmem>>, %arg4: memref<128x128xbf16, #tpu.memory_space<vmem>>, %arg5: memref<8x128xf32, #tpu.memory_space<vmem>>, %arg6: memref<3x64x128xf32, #tpu.memory_space<vmem>>, %arg7: memref<1x8x128xf32, #tpu.memory_space<vmem>>, %arg8: memref<64x384xbf16, #tpu.memory_space<vmem>>) attributes {dimension_semantics = [#tpu.dimension_semantics<parallel>, #tpu.dimension_semantics<arbitrary>], iteration_bounds = array<i64: 1, 1>, scalar_prefetch = 0 : i64, scratch_operands = 1 : i64, tpu.core_type = #tpu.core_type<tc>, window_params = [{pipeline_mode = #tpu.pipeline_mode<synchronous>, transform_indices = @transform_0, window_bounds = array<i64: 48, 384>}, {transform_indices = @transform_1, window_bounds = array<i64: 64, 48>}, {transform_indices = @transform_2, window_bounds = array<i64: 128, 128>}, {pipeline_mode = #tpu.pipeline_mode<synchronous>, transform_indices = @transform_3, window_bounds = array<i64: 8, 128>}, {transform_indices = @transform_4, window_bounds = array<i64: 3, 64, 128>}, {transform_indices = @transform_5, window_bounds = array<i64: 1, 8, 128>}]} {
    %c0_i32 = arith.constant 0 : i32
    %0 = arith.cmpi eq, %arg1, %c0_i32 : i32
    %1 = arith.extui %0 : i1 to i32
    %c0_i32_0 = arith.constant 0 : i32
    %2 = arith.cmpi ne, %1, %c0_i32_0 : i32
    scf.if %2 {
      %c0_27 = arith.constant 0 : index
      %c0_28 = arith.constant 0 : index
      %55 = vector.load %arg3[%c0_27, %c0_28] : memref<64x48xbf16, #tpu.memory_space<vmem>>, vector<64x48xbf16>
      %c0_29 = arith.constant 0 : index
      %c0_30 = arith.constant 0 : index
      %56 = vector.load %arg2[%c0_29, %c0_30] : memref<48x384xbf16, #tpu.memory_space<vmem>>, vector<48x384xbf16>
      %cst_31 = arith.constant dense<0.000000e+00> : vector<64x384xf32>
      %57 = tpu.matmul %55, %56, %cst_31 {dimension_numbers = #tpu.dot_dimension_numbers<[1], [0], [0], [1], [0, 0, 1, 1], [], []>} : vector<64x48xbf16>, vector<48x384xbf16>, vector<64x384xf32> -> vector<64x384xf32>
      %58 = arith.truncf %57 : vector<64x384xf32> to vector<64x384xbf16>
      %c0_32 = arith.constant 0 : index
      %c0_33 = arith.constant 0 : index
      %59 = vector.load %arg8[%c0_32, %c0_33] : memref<64x384xbf16, #tpu.memory_space<vmem>>, vector<64x384xbf16>
      tpu.vector_store %arg8[%c0_32, %c0_33], %58 {strides = array<i32>} : memref<64x384xbf16, #tpu.memory_space<vmem>>, vector<64x384xbf16>,
    } else {
    }
    %3 = tpu.iota {dimensions = array<i32: 0>} : vector<64x1xi32>
    %c64_i32 = arith.constant 64 : i32
    %4 = arith.muli %arg0, %c64_i32 : i32
    %5 = vector.broadcast %4 : i32 to vector<64x1xi32>
    %6 = arith.addi %3, %5 : vector<64x1xi32>
    %c64_i32_1 = arith.constant 64 : i32
    %7 = vector.broadcast %c64_i32_1 : i32 to vector<64x1xi32>
    %8 = arith.cmpi slt, %6, %7 : vector<64x1xi32>
    %9 = tpu.iota {dimensions = array<i32: 1>} : vector<1x128xi32>
    %c128_i32 = arith.constant 128 : i32
    %10 = arith.muli %arg1, %c128_i32 : i32
    %11 = vector.broadcast %10 : i32 to vector<1x128xi32>
    %12 = arith.addi %9, %11 : vector<1x128xi32>
    %c75_i32 = arith.constant 75 : i32
    %13 = vector.broadcast %c75_i32 : i32 to vector<1x128xi32>
    %14 = arith.cmpi slt, %12, %13 : vector<1x128xi32>
    %15 = vector.broadcast %8 : vector<64x1xi1> to vector<64x128xi1>
    %16 = vector.broadcast %14 : vector<1x128xi1> to vector<64x128xi1>
    %17 = arith.andi %15, %16 : vector<64x128xi1>
    %c0 = arith.constant 0 : index
    %c0_2 = arith.constant 0 : index
    %18 = vector.load %arg4[%c0, %c0_2] : memref<128x128xbf16, #tpu.memory_space<vmem>>, vector<128x128xbf16>
    %c0_3 = arith.constant 0 : index
    %c0_4 = arith.constant 0 : index
    %19 = vector.load %arg8[%c0_3, %c0_4] : memref<64x384xbf16, #tpu.memory_space<vmem>>, vector<64x128xbf16>
    %cst = arith.constant dense<0.000000e+00> : vector<64x128xf32>
    %20 = tpu.matmul %19, %18, %cst {dimension_numbers = #tpu.dot_dimension_numbers<[1], [0], [0], [1], [0, 0, 1, 1], [], []>} : vector<64x128xbf16>, vector<128x128xbf16>, vector<64x128xf32> -> vector<64x128xf32>
    %cst_5 = arith.constant 4.36681223 : f32
    %21 = vector.broadcast %cst_5 : f32 to vector<64x128xf32>
    %22 = arith.mulf %20, %21 : vector<64x128xf32>
    %cst_6 = arith.constant -2.11790395 : f32
    %23 = vector.broadcast %cst_6 : f32 to vector<64x128xf32>
    %24 = arith.addf %22, %23 : vector<64x128xf32>
    %cst_7 = arith.constant -1.656820e-01 : f32
    %25 = vector.broadcast %cst_7 : f32 to vector<64x128xf32>
    %26 = arith.select %17, %24, %25 : vector<64x128xi1>, vector<64x128xf32>
    %c0_8 = arith.constant 0 : index
    %c0_9 = arith.constant 0 : index
    %c0_10 = arith.constant 0 : index
    %27 = vector.load %arg6[%c0_8, %c0_9, %c0_10] : memref<3x64x128xf32, #tpu.memory_space<vmem>>, vector<1x64x128xf32>
    %28 = vector.shape_cast %27 : vector<1x64x128xf32> to vector<64x128xf32>
    %29 = vector.shape_cast %26 : vector<64x128xf32> to vector<1x64x128xf32>
    tpu.vector_store %arg6[%c0_8, %c0_9, %c0_10], %29 {strides = array<i32>} : memref<3x64x128xf32, #tpu.memory_space<vmem>>, vector<1x64x128xf32>,
    %c0_11 = arith.constant 0 : index
    %c128 = arith.constant 128 : index
    %30 = vector.load %arg8[%c0_11, %c128] : memref<64x384xbf16, #tpu.memory_space<vmem>>, vector<64x128xbf16>
    %cst_12 = arith.constant dense<0.000000e+00> : vector<64x128xf32>
    %31 = tpu.matmul %30, %18, %cst_12 {dimension_numbers = #tpu.dot_dimension_numbers<[1], [0], [0], [1], [0, 0, 1, 1], [], []>} : vector<64x128xbf16>, vector<128x128xbf16>, vector<64x128xf32> -> vector<64x128xf32>
    %cst_13 = arith.constant 4.46428537 : f32
    %32 = vector.broadcast %cst_13 : f32 to vector<64x128xf32>
    %33 = arith.mulf %31, %32 : vector<64x128xf32>
    %cst_14 = arith.constant -2.03571415 : f32
    %34 = vector.broadcast %cst_14 : f32 to vector<64x128xf32>
    %35 = arith.addf %33, %34 : vector<64x128xf32>
    %cst_15 = arith.constant -0.0399159826 : f32
    %36 = vector.broadcast %cst_15 : f32 to vector<64x128xf32>
    %37 = arith.select %17, %35, %36 : vector<64x128xi1>, vector<64x128xf32>
    %c1 = arith.constant 1 : index
    %c0_16 = arith.constant 0 : index
    %c0_17 = arith.constant 0 : index
    %38 = vector.load %arg6[%c1, %c0_16, %c0_17] : memref<3x64x128xf32, #tpu.memory_space<vmem>>, vector<1x64x128xf32>
    %39 = vector.shape_cast %38 : vector<1x64x128xf32> to vector<64x128xf32>
    %40 = vector.shape_cast %37 : vector<64x128xf32> to vector<1x64x128xf32>
    tpu.vector_store %arg6[%c1, %c0_16, %c0_17], %40 {strides = array<i32>} : memref<3x64x128xf32, #tpu.memory_space<vmem>>, vector<1x64x128xf32>,
    %c0_18 = arith.constant 0 : index
    %c256 = arith.constant 256 : index
    %41 = vector.load %arg8[%c0_18, %c256] : memref<64x384xbf16, #tpu.memory_space<vmem>>, vector<64x128xbf16>
    %cst_19 = arith.constant dense<0.000000e+00> : vector<64x128xf32>
    %42 = tpu.matmul %41, %18, %cst_19 {dimension_numbers = #tpu.dot_dimension_numbers<[1], [0], [0], [1], [0, 0, 1, 1], [], []>} : vector<64x128xbf16>, vector<128x128xbf16>, vector<64x128xf32> -> vector<64x128xf32>
    %cst_20 = arith.constant 4.44444466 : f32
    %43 = vector.broadcast %cst_20 : f32 to vector<64x128xf32>
    %44 = arith.mulf %42, %43 : vector<64x128xf32>
    %cst_21 = arith.constant -1.80444443 : f32
    %45 = vector.broadcast %cst_21 : f32 to vector<64x128xf32>
    %46 = arith.addf %44, %45 : vector<64x128xf32>
    %cst_22 = arith.constant 0.182483763 : f32
    %47 = vector.broadcast %cst_22 : f32 to vector<64x128xf32>
    %48 = arith.select %17, %46, %47 : vector<64x128xi1>, vector<64x128xf32>
    %c2 = arith.constant 2 : index
    %c0_23 = arith.constant 0 : index
    %c0_24 = arith.constant 0 : index
    %49 = vector.load %arg6[%c2, %c0_23, %c0_24] : memref<3x64x128xf32, #tpu.memory_space<vmem>>, vector<1x64x128xf32>
    %50 = vector.shape_cast %49 : vector<1x64x128xf32> to vector<64x128xf32>
    %51 = vector.shape_cast %48 : vector<64x128xf32> to vector<1x64x128xf32>
    tpu.vector_store %arg6[%c2, %c0_23, %c0_24], %51 {strides = array<i32>} : memref<3x64x128xf32, #tpu.memory_space<vmem>>, vector<1x64x128xf32>,
    %c0_i32_25 = arith.constant 0 : i32
    %52 = arith.cmpi eq, %arg1, %c0_i32_25 : i32
    %53 = arith.extui %52 : i1 to i32
    %c0_i32_26 = arith.constant 0 : i32
    %54 = arith.cmpi ne, %53, %c0_i32_26 : i32
    scf.if %54 {
      %c0_27 = arith.constant 0 : index
      %c0_28 = arith.constant 0 : index
      %55 = vector.load %arg5[%c0_27, %c0_28] : memref<8x128xf32, #tpu.memory_space<vmem>>, vector<8x128xf32>
      %56 = vector.extract_strided_slice %55 {offsets = [0, 0], sizes = [1, 128], strides = [1, 1]} : vector<8x128xf32> to vector<1x128xf32>
      %cst_29 = arith.constant 0.000000e+00 : f32
      %57 = vector.broadcast %cst_29 : f32 to vector<1x128xf32>
      %58 = arith.subf %56, %57 : vector<1x128xf32>
      %59 = vector.extract_strided_slice %55 {offsets = [1, 0], sizes = [1, 128], strides = [1, 1]} : vector<8x128xf32> to vector<1x128xf32>
      %cst_30 = arith.constant 0.000000e+00 : f32
      %60 = vector.broadcast %cst_30 : f32 to vector<1x128xf32>
      %61 = arith.subf %59, %60 : vector<1x128xf32>
      %62 = vector.extract_strided_slice %55 {offsets = [2, 0], sizes = [1, 128], strides = [1, 1]} : vector<8x128xf32> to vector<1x128xf32>
      %cst_31 = arith.constant 0.000000e+00 : f32
      %63 = vector.broadcast %cst_31 : f32 to vector<1x128xf32>
      %64 = arith.subf %62, %63 : vector<1x128xf32>
      %65 = vector.extract_strided_slice %55 {offsets = [3, 0], sizes = [1, 128], strides = [1, 1]} : vector<8x128xf32> to vector<1x128xf32>
      %cst_32 = arith.constant 0.000000e+00 : f32
      %66 = vector.broadcast %cst_32 : f32 to vector<1x128xf32>
      %67 = arith.subf %65, %66 : vector<1x128xf32>
      %cst_33 = arith.constant 0.000000e+00 : f32
      %68 = vector.broadcast %cst_33 : f32 to vector<1x128xf32>
      %69 = arith.cmpf olt, %58, %68 : vector<1x128xf32>
      %cst_34 = arith.constant 0.000000e+00 : f32
      %70 = vector.broadcast %cst_34 : f32 to vector<1x128xf32>
      %71 = arith.cmpf olt, %64, %70 : vector<1x128xf32>
      %72 = arith.andi %69, %71 : vector<1x128xi1>
      %cst_35 = arith.constant 4.500000e+01 : f32
      %73 = vector.broadcast %cst_35 : f32 to vector<1x128xf32>
      %74 = arith.cmpf ogt, %58, %73 : vector<1x128xf32>
      %cst_36 = arith.constant 4.500000e+01 : f32
      %75 = vector.broadcast %cst_36 : f32 to vector<1x128xf32>
      %76 = arith.cmpf ogt, %64, %75 : vector<1x128xf32>
      %77 = arith.andi %74, %76 : vector<1x128xi1>
      %78 = arith.ori %72, %77 : vector<1x128xi1>
      %cst_37 = arith.constant 0.000000e+00 : f32
      %79 = vector.broadcast %cst_37 : f32 to vector<1x128xf32>
      %80 = arith.cmpf olt, %61, %79 : vector<1x128xf32>
      %cst_38 = arith.constant 0.000000e+00 : f32
      %81 = vector.broadcast %cst_38 : f32 to vector<1x128xf32>
      %82 = arith.cmpf olt, %67, %81 : vector<1x128xf32>
      %83 = arith.andi %80, %82 : vector<1x128xi1>
      %84 = arith.ori %78, %83 : vector<1x128xi1>
      %cst_39 = arith.constant 3.800000e+01 : f32
      %85 = vector.broadcast %cst_39 : f32 to vector<1x128xf32>
      %86 = arith.cmpf ogt, %61, %85 : vector<1x128xf32>
      %cst_40 = arith.constant 3.800000e+01 : f32
      %87 = vector.broadcast %cst_40 : f32 to vector<1x128xf32>
      %88 = arith.cmpf ogt, %67, %87 : vector<1x128xf32>
      %89 = arith.andi %86, %88 : vector<1x128xi1>
      %90 = arith.ori %84, %89 : vector<1x128xi1>
      %cst_41 = arith.constant dense<true> : vector<1x128xi1>
      %91 = arith.xori %90, %cst_41 : vector<1x128xi1>
      %cst_42 = arith.constant 0.000000e+00 : f32
      %92 = vector.broadcast %cst_42 : f32 to vector<1x128xf32>
      %93 = arith.maximumf %58, %92 : vector<1x128xf32>
      %cst_43 = arith.constant 0.000000e+00 : f32
      %94 = vector.broadcast %cst_43 : f32 to vector<1x128xf32>
      %95 = arith.maximumf %61, %94 : vector<1x128xf32>
      %cst_44 = arith.constant 4.500000e+01 : f32
      %96 = vector.broadcast %cst_44 : f32 to vector<1x128xf32>
      %97 = arith.minimumf %64, %96 : vector<1x128xf32>
      %cst_45 = arith.constant 3.800000e+01 : f32
      %98 = vector.broadcast %cst_45 : f32 to vector<1x128xf32>
      %99 = arith.minimumf %67, %98 : vector<1x128xf32>
      %cst_46 = arith.constant 0.000000e+00 : f32
      %100 = vector.broadcast %cst_46 : f32 to vector<1x128xf32>
      %cst_47 = arith.constant 1.68421054 : f32
      %101 = vector.broadcast %cst_47 : f32 to vector<1x128xf32>
      %102 = arith.mulf %93, %101 : vector<1x128xf32>
      %cst_48 = arith.constant 1.68421054 : f32
      %103 = vector.broadcast %cst_48 : f32 to vector<1x128xf32>
      %104 = arith.mulf %95, %103 : vector<1x128xf32>
      %cst_49 = arith.constant 1.68421054 : f32
      %105 = vector.broadcast %cst_49 : f32 to vector<1x128xf32>
      %106 = arith.mulf %97, %105 : vector<1x128xf32>
      %cst_50 = arith.constant 1.68421054 : f32
      %107 = vector.broadcast %cst_50 : f32 to vector<1x128xf32>
      %108 = arith.mulf %99, %107 : vector<1x128xf32>
      %109 = arith.extui %91 : vector<1x128xi1> to vector<1x128xi32>
      %110 = arith.sitofp %109 : vector<1x128xi32> to vector<1x128xf32>
      %111 = tpu.concatenate %102, %104, %106, %108, %110, %100, %100, %100 in 0 : vector<1x128xf32>, vector<1x128xf32>, vector<1x128xf32>, vector<1x128xf32>, vector<1x128xf32>, vector<1x128xf32>, vector<1x128xf32>, vector<1x128xf32> -> vector<8x128xf32>
      %c0_51 = arith.constant 0 : index
      %c0_52 = arith.constant 0 : index
      %c0_53 = arith.constant 0 : index
      %112 = vector.load %arg7[%c0_51, %c0_52, %c0_53] : memref<1x8x128xf32, #tpu.memory_space<vmem>>, vector<1x8x128xf32>
      %113 = vector.shape_cast %112 : vector<1x8x128xf32> to vector<8x128xf32>
      %114 = vector.shape_cast %111 : vector<8x128xf32> to vector<1x8x128xf32>
      tpu.vector_store %arg7[%c0_51, %c0_52, %c0_53], %114 {strides = array<i32>} : memref<1x8x128xf32, #tpu.memory_space<vmem>>, vector<1x8x128xf32>,
    } else {
    }
    return
  }
  func.func @transform_0(%arg0: i32, %arg1: i32) -> (i32, i32) {
    %c0_i32 = arith.constant 0 : i32
    %c0_i32_0 = arith.constant 0 : i32
    %c0_i32_1 = arith.constant 0 : i32
    return %c0_i32, %c0_i32_0 : i32, i32
  }
  func.func @transform_1(%arg0: i32, %arg1: i32) -> (i32, i32) {
    %c0_i32 = arith.constant 0 : i32
    %c0_i32_0 = arith.constant 0 : i32
    return %arg0, %c0_i32 : i32, i32
  }
  func.func @transform_2(%arg0: i32, %arg1: i32) -> (i32, i32) {
    %c0_i32 = arith.constant 0 : i32
    %c0_i32_0 = arith.constant 0 : i32
    return %c0_i32, %arg1 : i32, i32
  }
  func.func @transform_3(%arg0: i32, %arg1: i32) -> (i32, i32) {
    %c0_i32 = arith.constant 0 : i32
    %c0_i32_0 = arith.constant 0 : i32
    %c0_i32_1 = arith.constant 0 : i32
    return %c0_i32, %c0_i32_0 : i32, i32
  }
  func.func @transform_4(%arg0: i32, %arg1: i32) -> (i32, i32, i32) {
    %c0_i32 = arith.constant 0 : i32
    %c0_i32_0 = arith.constant 0 : i32
    return %c0_i32, %arg0, %arg1 : i32, i32, i32
  }
  func.func @transform_5(%arg0: i32, %arg1: i32) -> (i32, i32, i32) {
    %c0_i32 = arith.constant 0 : i32
    %c0_i32_0 = arith.constant 0 : i32
    %c0_i32_1 = arith.constant 0 : i32
    return %arg0, %c0_i32, %c0_i32_0 : i32, i32, i32
  }
}

</mosaic_0001>

<bundles_post_ra>
// kernel: tpu_custom_call.1
= control target key start
LH: loop header
LB: loop body
LE: loop exit
PB: predicated region body
PF: predicated region fallthrough
CT: control target
= control target key end

     0   :  { %11 = vsyncpa [#allocation4], 0  ;;  %s1239_s0 = inlined_call_operand.hbm [shape: bf16[48,384], index: 0, kind: input, shape index: {}]   ;;  %s1240_s1 = inlined_call_operand.vmem [shape: bf16[64,48], index: 1, kind: input, shape index: {}]   ;;  %s1241_s2 = inlined_call_operand.hbm [shape: bf16[128,128], index: 2, kind: input, shape index: {}]   ;;  %s1242_s3 = inlined_call_operand.vmem [shape: f32[8,128], index: 3, kind: input, shape index: {}]   ;;  %s1243_s4 = inlined_call_operand.hbm [shape: f32[3,64,128], index: 4, kind: output, shape index: {0}]   ;;  %s1244_s5 = inlined_call_operand.hbm [shape: f32[1,8,128], index: 5, kind: output, shape index: {1}]  }
   0x1   :  { %12 = vsyncpa [#allocation7], 0 }
   0x2   :  { %13 = vsyncpa [#allocation5], 0 }
   0x3   :  { %14 = vsyncpa [#allocation10], 0  ;;  %s19_s20 = sshll.u32 %s1239_s0, 4  ;;  %s1072_s21 = smov [#allocation3]   ;;  %s20_s20 = int_to_ptr.hbm [resolvable:$true] %s19_s20 }
   0x4   :  { %s21_s22 = sshll.u32 %s1072_s21, 4  ;;  %s34_s25 = sshll.u32 %s1241_s2, 4  ;;  %s22_s22 = int_to_ptr.vmem [resolvable:$true] %s21_s22  ;;  %s35_s25 = int_to_ptr.hbm [resolvable:$true] %s34_s25 }
   0x5   :  { %s1073_s26 = smov 192   ;;  %s1074_s27 = smov 12  }
   0x6   :  { %27 = dma.hbm_to_vmem [thread:$0]  %s20_s20, 1152, %s22_s22, [#allocation4], %s1073_s26, %s1073_s26, %s1074_s27  }
   0x7   :  { %s1075_s28 = smov [#allocation6]   ;;  %s1076_s30 = smov 64  }
   0x8   :  { %s36_s29 = sshll.u32 %s1075_s28, 4  ;;  %s1077_s6 = smov 4   ;;  %s37_s29 = int_to_ptr.vmem [resolvable:$true] %s36_s29 }
   0x9   :  { %42 = dma.hbm_to_vmem [thread:$0]  %s35_s25, 1024, %s37_s29, [#allocation7], %s1076_s30, %s1076_s30, %s1077_s6  }
   0xa   :  { %1064 = dma.done.wait [#allocation4], 1152  }
   0xb   :  { %1065 = vsyncadd [#allocation4], 4294966144 }
   0xc   :  { %1066 = dma.done.wait [#allocation7], 1024  }
   0xd   :  { %1067 = vsyncadd [#allocation7], 4294966272  ;;  %v813_v0 = vld [vmem:[#allocation3 + $0x30] sm:$0xf]  ;;  %v927_v1 = vld [vmem:[#allocation3 + $0x38] sm:$0xf0] }
   0xe   :  { %v926_v2 = vld [vmem:[#allocation3 + $0x34] sm:$0xf]  ;;  %v814_v3 = vor.u32 %v927_v1, %v813_v0  ;;  %v815_v4 = vld [vmem:[#allocation3 + $0x3c] sm:$0xf0]  ;;  %v801_v5 = vld [vmem:[#allocation3 + $0x18] sm:$0xf] }
   0xf   :  { %v924_v6 = vld [vmem:[#allocation3 + $0x20] sm:$0xf0]  ;;  %v818_v7 = vor.u32 %v926_v2, %v815_v4  ;;  %v923_v8 = vld [vmem:[#allocation3 + $0x1c] sm:$0xf]  ;;  %v803_v9 = vld [vmem:[#allocation3 + $0x24] sm:$0xf0] }
  0x10   :  { %164 = vmatpush.bf16.msra.mxu0 %v814_v3  ;;  %949 = vmatpush.bf16.msra.mxu2 %v814_v3  ;;  %v802_v10 = vor.u32 %v924_v6, %v801_v5  ;;  %v806_v11 = vor.u32 %v923_v8, %v803_v9  ;;  %v789_v12 = vld [vmem:[#allocation3] sm:$0xf]  ;;  %v921_v13 = vld [vmem:[#allocation3 + $0x8] sm:$0xf0]  ;;  %v920_v14 = vld [vmem:[#allocation3 + $0x4] sm:$0xf] }
  0x11   :  { %193 = vmatpush.bf16.msra.mxu1 %v818_v7  ;;  %952 = vmatpush.bf16.msra.mxu3 %v818_v7  ;;  %v791_v15 = vld [vmem:[#allocation3 + $0xc] sm:$0xf0]  ;;  %v821_v16 = vld [vmem:[#allocation3 + $0x38] sm:$0xf]  ;;  %v928_v17 = vld [vmem:[#allocation3 + $0x40] sm:$0xf0]  ;;  %v790_v18 = vor.u32 %v921_v13, %v789_v12 }
  0x12   :  { %v794_v19 = vor.u32 %v920_v14, %v791_v15  ;;  %v916_v20 = vld [vmem:[%s1240_s1] sm:$0xff]  ;;  %v822_v21 = vor.u32 %v928_v17, %v821_v16  ;;  %v918_v22 = vld [vmem:[%s1240_s1 + $0x10] sm:$0xff]  ;;  %v925_v24 = vld [vmem:[#allocation3 + $0x28] sm:$0xf0]  ;;  %vm146_vm0 = vcmask 392192   ;;  %s755_s17 = sshll.u32 %s1244_s5, 4  ;;  %s756_s17 = int_to_ptr.hbm [resolvable:$true] %s755_s17 }
  0x13   :  { %v809_v23 = vld [vmem:[#allocation3 + $0x20] sm:$0xf]  ;;  %v797_v26 = vld [vmem:[#allocation3 + $0x8] sm:$0xf]  ;;  %v922_v27 = vld [vmem:[#allocation3 + $0x10] sm:$0xf0] }
  0x14   :  { %165 = vmatpush.bf16.msra.mxu0 %v802_v10  ;;  %950 = vmatpush.bf16.msra.mxu2 %v802_v10  ;;  %v810_v25 = vor.u32 %v925_v24, %v809_v23  ;;  %v798_v28 = vor.u32 %v922_v27, %v797_v26  ;;  %v917_v29 = vld [vmem:[%s1240_s1 + $0x8] sm:$0xff]  ;;  %v919_v30 = vld [vmem:[%s1240_s1 + $0x18] sm:$0xff]  ;;  %v936_v31 = vld [vmem:[#allocation6 + $0x38] sm:$0xff]  ;;  %s1082_s5 = smov [#allocation8]   ;;  %s741_s21 = sshll.u32 %s1243_s4, 4  ;;  %s742_s21 = int_to_ptr.hbm [resolvable:$true] %s741_s21 }
  0x15   :  { %194 = vmatpush.bf16.msra.mxu1 %v806_v11  ;;  %953 = vmatpush.bf16.msra.mxu3 %v806_v11  ;;  %v935_v32 = vld [vmem:[#allocation6 + $0x30] sm:$0xff]  ;;  %v934_v33 = vld [vmem:[#allocation6 + $0x28] sm:$0xff]  ;;  %v933_v34 = vld [vmem:[#allocation6 + $0x20] sm:$0xff]  ;;  %s739_s18 = sshll.u32 %s1082_s5, 4  ;;  %s1083_s22 = smov 128   ;;  %s740_s18 = int_to_ptr.vmem [resolvable:$true] %s739_s18 }
  0x16   :  { %v932_v35 = vld [vmem:[#allocation6 + $0x18] sm:$0xff]  ;;  %v931_v36 = vld [vmem:[#allocation6 + $0x10] sm:$0xff]  ;;  %v930_v37 = vld [vmem:[#allocation6 + $0x8] sm:$0xff]  ;;  %s1084_s23 = smov 8  }
  0x17   :  { %v929_v38 = vld [vmem:[#allocation6] sm:$0xff] }
  0x18   :  { %166 = vmatpush.bf16.msra.mxu0 %v790_v18  ;;  %951 = vmatpush.bf16.msra.mxu2 %v790_v18 }
  0x19   :  { %195 = vmatpush.bf16.msra.mxu1 %v794_v19  ;;  %954 = vmatpush.bf16.msra.mxu3 %v794_v19 }
  0x1b   :  { %823 = vmatmul.msk.bf16.vlgmr.msra.gmra.mxu0 %vm146_vm0, %v916_v20  ;;  %825 = vmatmul.msk.bf16.vlgmr.msra.gmra.mxu2 %vm146_vm0, %v918_v22 }
  0x1c   :  { %222 = vmatpush.bf16.msrb.mxu2 %v822_v21  ;;  %827 = vmatmul.msk.bf16.vlgmr.msra.gmra.mxu1 %vm146_vm0, %v916_v20 }
  0x1d   :  { %829 = vmatmul.msk.bf16.vlgmr.msra.gmra.mxu3 %vm146_vm0, %v918_v22  ;;  %526 = vmatpush.bf16.msrb.mxu0 %v936_v31 }
  0x1e   :  { %433 = vmatpush.bf16.msrb.mxu3 %v936_v31  ;;  %620 = vmatpush.bf16.msrb.mxu1 %v936_v31 }
  0x20   :  { %223 = vmatpush.bf16.msrb.mxu2 %v810_v25 }
  0x21   :  { %527 = vmatpush.bf16.msrb.mxu0 %v935_v32 }
  0x22   :  { %434 = vmatpush.bf16.msrb.mxu3 %v935_v32  ;;  %621 = vmatpush.bf16.msrb.mxu1 %v935_v32 }
  0x24   :  { %224 = vmatpush.bf16.msrb.mxu2 %v798_v28 }
  0x25   :  { %528 = vmatpush.bf16.msrb.mxu0 %v934_v33 }
  0x26   :  { %435 = vmatpush.bf16.msrb.mxu3 %v934_v33  ;;  %622 = vmatpush.bf16.msrb.mxu1 %v934_v33 }
  0x29   :  { %529 = vmatpush.bf16.msrb.mxu0 %v933_v34 }
  0x2a   :  { %436 = vmatpush.bf16.msrb.mxu3 %v933_v34  ;;  %623 = vmatpush.bf16.msrb.mxu1 %v933_v34 }
  0x2b   :  { %824 = vmatmul.msk.bf16.gmra.mxu0 %vm146_vm0, %v917_v29  ;;  %826 = vmatmul.msk.bf16.gmra.mxu2 %vm146_vm0, %v919_v30 }
  0x2c   :  { %828 = vmatmul.msk.bf16.gmra.mxu1 %vm146_vm0, %v917_v29 }
  0x2d   :  { %830 = vmatmul.msk.bf16.gmra.mxu3 %vm146_vm0, %v919_v30  ;;  %530 = vmatpush.bf16.msrb.mxu0 %v932_v35 }
  0x2e   :  { %437 = vmatpush.bf16.msrb.mxu3 %v932_v35  ;;  %624 = vmatpush.bf16.msrb.mxu1 %v932_v35 }
  0x31   :  { %531 = vmatpush.bf16.msrb.mxu0 %v931_v36 }
  0x32   :  { %438 = vmatpush.bf16.msrb.mxu3 %v931_v36  ;;  %625 = vmatpush.bf16.msrb.mxu1 %v931_v36 }
  0x35   :  { %532 = vmatpush.bf16.msrb.mxu0 %v930_v37 }
  0x36   :  { %439 = vmatpush.bf16.msrb.mxu3 %v930_v37  ;;  %626 = vmatpush.bf16.msrb.mxu1 %v930_v37 }
  0x39   :  { %533 = vmatpush.bf16.msrb.mxu0 %v929_v38 }
  0x3a   :  { %440 = vmatpush.bf16.msrb.mxu3 %v929_v38  ;;  %627 = vmatpush.bf16.msrb.mxu1 %v929_v38 }
  0x3b   :  { %831 = vmatmul.msk.bf16.vlgmr.msrb.gmra.mxu2 %vm146_vm0, %v916_v20 }
  0x4b   :  { %832 = vmatmul.msk.bf16.gmra.mxu2 %vm146_vm0, %v917_v29 }
  0x5b   :  { %833 = vmatmul.msk.bf16.gmra.mxu2 %vm146_vm0, %v918_v22 }
  0x6b   :  { %834 = vmatmul.msk.bf16.gmra.mxu2 %vm146_vm0, %v919_v30  ;;  %vm1079_vm0 = vmmov 1  }
  0x98   :  { %v168_v39 = vpop.f32.mrf.mxu0 }
  0x99   :  { %v197_v40 = vpop.f32.mrf.mxu1 }
  0x9a   :  { %v246_v41 = vpack.c.bf16 %v197_v40, %v168_v39 }
  0x9c   :  { %262 = vst [vmem:[#allocation2] sm:$0xff] %v246_v41 }
  0x9e   :  { %v178_v42 = vpop.f32.mrf.mxu2 }
  0xa0   :  { %v207_v43 = vpop.f32.mrf.mxu3  ;;  %v170_v45 = vpop.f32.mrf.mxu0 }
  0xa1   :  { %v254_v44 = vpack.c.bf16 %v207_v43, %v178_v42  ;;  %v199_v46 = vpop.f32.mrf.mxu1 }
  0xa2   :  { %v248_v47 = vpack.c.bf16 %v199_v46, %v170_v45 }
  0xa3   :  { %270 = vst [vmem:[#allocation2 + $0x30] sm:$0xff] %v254_v44  ;;  %v837_v53 = vld [vmem:[#allocation2] sm:$0xf]  ;;  %v885_v54 = vld [vmem:[#allocation2 + $0x4] sm:$0xf] }
  0xa4   :  { %264 = vst [vmem:[#allocation2 + $0xc] sm:$0xff] %v248_v47 }
  0xa6   :  { %v180_v48 = vpop.f32.mrf.mxu2 }
  0xa8   :  { %v209_v49 = vpop.f32.mrf.mxu3  ;;  %v173_v51 = vpop.f32.mrf.mxu0 }
  0xa9   :  { %v256_v50 = vpack.c.bf16 %v209_v49, %v180_v48  ;;  %v202_v52 = vpop.f32.mrf.mxu1 }
  0xaa   :  { %v250_v55 = vpack.c.bf16 %v202_v52, %v173_v51  ;;  %v845_v17 = vld [vmem:[#allocation2 + $0x30] sm:$0xf]  ;;  %v893_v18 = vld [vmem:[#allocation2 + $0x34] sm:$0xf]  ;;  %v305_v51 = vlaneseq }
  0xab   :  { %272 = vst [vmem:[#allocation2 + $0x3c] sm:$0xff] %v256_v50  ;;  %v937_v56 = vld [vmem:[#allocation2 + $0x8] sm:$0xf0]  ;;  %v941_v57 = vld [vmem:[#allocation2 + $0xc] sm:$0xf0] }
  0xac   :  { %266 = vst [vmem:[#allocation2 + $0x18] sm:$0xff] %v250_v55  ;;  %v838_v58 = vor.u32 %v937_v56, %v837_v53  ;;  %v886_v59 = vor.u32 %v941_v57, %v885_v54  ;;  %v1145_v52 = vand.u32 127, %v305_v51 }
  0xae   :  { %441 = vmatmul.bf16.vlgmr.msrb.gmra.mxu3 %v838_v58  ;;  %534 = vmatmul.bf16.vlgmr.msrb.gmra.mxu0 %v886_v59  ;;  %v183_v60 = vpop.f32.mrf.mxu2  ;;  %vm310_vm1 = vcmp.lt.s32.totalorder %v1145_v52, 75 }
  0xb0   :  { %v212_v61 = vpop.f32.mrf.mxu3  ;;  %v175_v63 = vpop.f32.mrf.mxu0 }
  0xb1   :  { %v258_v62 = vpack.c.bf16 %v212_v61, %v183_v60  ;;  %v204_v0 = vpop.f32.mrf.mxu1 }
  0xb2   :  { %v252_v1 = vpack.c.bf16 %v204_v0, %v175_v63  ;;  %v939_v15 = vld [vmem:[#allocation2 + $0x38] sm:$0xf0]  ;;  %v943_v16 = vld [vmem:[#allocation2 + $0x3c] sm:$0xf0] }
  0xb3   :  { %274 = vst [vmem:[#allocation2 + $0x48] sm:$0xff] %v258_v62  ;;  %v841_v5 = vld [vmem:[#allocation2 + $0x18] sm:$0xf]  ;;  %v889_v6 = vld [vmem:[#allocation2 + $0x1c] sm:$0xf]  ;;  %v846_v19 = vor.u32 %v939_v15, %v845_v17  ;;  %v894_v20 = vor.u32 %v943_v16, %v893_v18 }
  0xb4   :  { %268 = vst [vmem:[#allocation2 + $0x24] sm:$0xff] %v252_v1 }
  0xb6   :  { %v185_v2 = vpop.f32.mrf.mxu2 }
  0xb8   :  { %v214_v3 = vpop.f32.mrf.mxu3 }
  0xb9   :  { %v260_v4 = vpack.c.bf16 %v214_v3, %v185_v2 }
  0xba   :  { %v849_v30 = vld [vmem:[#allocation2 + $0x48] sm:$0xf]  ;;  %v897_v31 = vld [vmem:[#allocation2 + $0x4c] sm:$0xf] }
  0xbb   :  { %276 = vst [vmem:[#allocation2 + $0x54] sm:$0xff] %v260_v4  ;;  %v938_v7 = vld [vmem:[#allocation2 + $0x20] sm:$0xf0]  ;;  %v942_v8 = vld [vmem:[#allocation2 + $0x24] sm:$0xf0] }
  0xbc   :  { %v842_v9 = vor.u32 %v938_v7, %v841_v5  ;;  %v890_v10 = vor.u32 %v942_v8, %v889_v6 }
  0xbe   :  { %446 = vmatmul.bf16.gmra.mxu3 %v842_v9  ;;  %539 = vmatmul.bf16.gmra.mxu0 %v890_v10  ;;  %v226_v11 = vpop.f32.mrf.mxu2 }
  0xbf   :  { %v247_v12 = vpack.c.bf16 %v226_v11, %v226_v11 }
  0xc1   :  { %263 = vst [vmem:[#allocation2 + $0x8] sm:$0xf] %v247_v12 }
  0xc2   :  { %v940_v28 = vld [vmem:[#allocation2 + $0x50] sm:$0xf0]  ;;  %v944_v29 = vld [vmem:[#allocation2 + $0x54] sm:$0xf0] }
  0xc3   :  { %v850_v32 = vor.u32 %v940_v28, %v849_v30  ;;  %v898_v33 = vor.u32 %v944_v29, %v897_v31 }
  0xc6   :  { %v228_v13 = vpop.f32.mrf.mxu2 }
  0xc7   :  { %v249_v14 = vpack.c.bf16 %v228_v13, %v228_v13 }
  0xc8   :  { %v901_v23 = vld [vmem:[#allocation2 + $0x8] sm:$0xf] }
  0xc9   :  { %265 = vst [vmem:[#allocation2 + $0x14] sm:$0xf] %v249_v14 }
  0xce   :  { %451 = vmatmul.bf16.gmra.mxu3 %v846_v19  ;;  %544 = vmatmul.bf16.gmra.mxu0 %v894_v20  ;;  %v231_v21 = vpop.f32.mrf.mxu2 }
  0xcf   :  { %v251_v22 = vpack.c.bf16 %v231_v21, %v231_v21 }
  0xd0   :  { %v945_v24 = vld [vmem:[#allocation2 + $0x10] sm:$0xf0] }
  0xd1   :  { %267 = vst [vmem:[#allocation2 + $0x20] sm:$0xf] %v251_v22  ;;  %v902_v25 = vor.u32 %v945_v24, %v901_v23 }
  0xd3   :  { %628 = vmatmul.bf16.vlgmr.msrb.gmra.mxu1 %v902_v25 }
  0xd6   :  { %v233_v26 = vpop.f32.mrf.mxu2 }
  0xd7   :  { %v253_v27 = vpack.c.bf16 %v233_v26, %v233_v26 }
  0xd8   :  { %v905_v36 = vld [vmem:[#allocation2 + $0x20] sm:$0xf] }
  0xd9   :  { %269 = vst [vmem:[#allocation2 + $0x2c] sm:$0xf] %v253_v27 }
  0xde   :  { %456 = vmatmul.bf16.gmra.mxu3 %v850_v32  ;;  %549 = vmatmul.bf16.gmra.mxu0 %v898_v33  ;;  %v236_v34 = vpop.f32.mrf.mxu2 }
  0xdf   :  { %v255_v35 = vpack.c.bf16 %v236_v34, %v236_v34 }
  0xe0   :  { %v946_v37 = vld [vmem:[#allocation2 + $0x28] sm:$0xf0] }
  0xe1   :  { %271 = vst [vmem:[#allocation2 + $0x38] sm:$0xf] %v255_v35  ;;  %v906_v38 = vor.u32 %v946_v37, %v905_v36 }
  0xe3   :  { %633 = vmatmul.bf16.gmra.mxu1 %v906_v38 }
  0xe6   :  { %v238_v39 = vpop.f32.mrf.mxu2 }
  0xe7   :  { %v257_v40 = vpack.c.bf16 %v238_v39, %v238_v39 }
  0xe8   :  { %v909_v43 = vld [vmem:[#allocation2 + $0x38] sm:$0xf] }
  0xe9   :  { %273 = vst [vmem:[#allocation2 + $0x44] sm:$0xf] %v257_v40 }
  0xee   :  { %v241_v41 = vpop.f32.mrf.mxu2 }
  0xef   :  { %v259_v42 = vpack.c.bf16 %v241_v41, %v241_v41  ;;  %v1175_v41 = vld [vmem:[%s1242_s3] sm:$0xff]  ;;  %s1081_s3 = smov [#allocation9]  }
  0xf0   :  { %v947_v44 = vld [vmem:[#allocation2 + $0x40] sm:$0xf0]  ;;  %vm686_vm2 = vcmp.lt.f32.partialorder %v1175_v41, 0.0  ;;  %vm701_vm3 = vcmp.gt.f32.partialorder %v1175_v41, 38.0  ;;  %vm691_vm4 = vcmp.gt.f32.partialorder %v1175_v41, 45.0  ;;  %s753_s14 = sshll.u32 %s1081_s3, 4  ;;  %s754_s14 = int_to_ptr.vmem [resolvable:$true] %s753_s14 }
  0xf1   :  { %275 = vst [vmem:[#allocation2 + $0x50] sm:$0xf] %v259_v42  ;;  %v910_v45 = vor.u32 %v947_v44, %v909_v43 }
  0xf3   :  { %638 = vmatmul.bf16.gmra.mxu1 %v910_v45 }
  0xf6   :  { %v243_v46 = vpop.f32.mrf.mxu2 }
  0xf7   :  { %v261_v47 = vpack.c.bf16 %v243_v46, %v243_v46  ;;  %v1078_v46 = vmov 0  }
  0xf8   :  { %v913_v48 = vld [vmem:[#allocation2 + $0x50] sm:$0xf] }
  0xf9   :  { %277 = vst [vmem:[#allocation2 + $0x5c] sm:$0xf] %v261_v47  ;;  %v687_v47 = vsel %vm686_vm2, 1, %v1078_v46 }
 0x100   :  { %v948_v49 = vld [vmem:[#allocation2 + $0x58] sm:$0xf0] }
 0x101   :  { %v914_v50 = vor.u32 %v948_v49, %v913_v48  ;;  %v688_v49 = vrot.slane %v687_v47, 2 }
 0x103   :  { %643 = vmatmul.bf16.gmra.mxu1 %v914_v50  ;;  %v702_v50 = vsel %vm701_vm3, 1, %v1078_v46  ;;  %vm689_vm5 = vcmp.ne.s32.totalorder %v688_v49, 0 }
 0x104   :  { %vm1194_vm6 = vmand %vm686_vm2, %vm689_vm5  ;;  %vm726_vm5 = vcmask 1043456  }
 0x12b   :  { %v535_v53 = vpop.f32.mrf.mxu0 }
 0x12c   :  { %v555_v54 = vmul.f32 4.4642854, %v535_v53 }
 0x12e   :  { %v563_v55 = vadd.f32 -2.0357141, %v555_v54  ;;  %v692_v54 = vsel %vm691_vm4, 1, %v1078_v46 }
 0x130   :  { %v571_v56 = vsel %vm310_vm1, %v563_v55, -0.039915983  ;;  %v703_v55 = vrot.slane %v702_v50, 2 }
 0x131   :  { %580 = vst [vmem:[#allocation8 + $0x40] sm:$0xff] %v571_v56  ;;  %v442_v57 = vpop.f32.mrf.mxu3 }
 0x132   :  { %v462_v58 = vmul.f32 4.366812, %v442_v57  ;;  %vm704_vm7 = vcmp.ne.s32.totalorder %v703_v55, 0 }
 0x133   :  { %v537_v59 = vpop.f32.mrf.mxu0  ;;  %vm705_vm9 = vmand %vm701_vm3, %vm704_vm7  ;;  %vm722_vm3 = vcmask 1041408   ;;  %vm730_vm7 = vcmask 1045504  }
 0x134   :  { %v470_v60 = vadd.f32 -2.117904, %v462_v58  ;;  %v556_v61 = vmul.f32 4.4642854, %v537_v59  ;;  %v693_v59 = vrot.slane %v692_v54, 2 }
 0x136   :  { %v478_v62 = vsel %vm310_vm1, %v470_v60, -0.165682  ;;  %v564_v63 = vadd.f32 -2.0357141, %v556_v61  ;;  %vm694_vm8 = vcmp.ne.s32.totalorder %v693_v59, 0 }
 0x137   :  { %486 = vst [vmem:[#allocation8] sm:$0xff] %v478_v62  ;;  %v697_v62 = vsel %vm1194_vm6, 1, %v1078_v46  ;;  %vm695_vm10 = vmand %vm691_vm4, %vm694_vm8  ;;  %vm724_vm4 = vcmask 1042432   ;;  %vm732_vm8 = vcmask 1046528  }
 0x138   :  { %v572_v0 = vsel %vm310_vm1, %v564_v63, -0.039915983  ;;  %vm696_vm11 = vmor %vm1194_vm6, %vm695_vm10  ;;  %vm728_vm6 = vcmask 1044480  }
 0x139   :  { %581 = vst [vmem:[#allocation8 + $0x48] sm:$0xff] %v572_v0  ;;  %v444_v1 = vpop.f32.mrf.mxu3  ;;  %v698_v0 = vrot.slane %v697_v62, 1 }
 0x13a   :  { %v463_v2 = vmul.f32 4.366812, %v444_v1 }
 0x13b   :  { %v540_v3 = vpop.f32.mrf.mxu0  ;;  %vm699_vm12 = vcmp.ne.s32.totalorder %v698_v0, 0 }
 0x13c   :  { %v471_v4 = vadd.f32 -2.117904, %v463_v2  ;;  %v557_v5 = vmul.f32 4.4642854, %v540_v3  ;;  %v706_v3 = vsel %vm705_vm9, 1, %v1078_v46  ;;  %vm1208_vm13 = vmor %vm696_vm11, %vm699_vm12 }
 0x13e   :  { %v479_v6 = vsel %vm310_vm1, %v471_v4, -0.165682  ;;  %v565_v7 = vadd.f32 -2.0357141, %v557_v5 }
 0x13f   :  { %487 = vst [vmem:[#allocation8 + $0x8] sm:$0xff] %v479_v6  ;;  %v707_v6 = vrot.slane %v706_v3, 1 }
 0x140   :  { %v573_v8 = vsel %vm310_vm1, %v565_v7, -0.039915983 }
 0x141   :  { %582 = vst [vmem:[#allocation8 + $0x50] sm:$0xff] %v573_v8  ;;  %v447_v9 = vpop.f32.mrf.mxu3  ;;  %vm708_vm14 = vcmp.ne.s32.totalorder %v707_v6, 0 }
 0x142   :  { %v464_v10 = vmul.f32 4.366812, %v447_v9  ;;  %v711_v9 = vmax.f32 %v1175_v41, 0.0  ;;  %vm709_vm15 = vmor %vm1208_vm13, %vm708_vm14 }
 0x143   :  { %v542_v11 = vpop.f32.mrf.mxu0  ;;  %vm710_vm2 = vmxor %vm709_vm15, %vm1079_vm0 }
 0x144   :  { %v472_v12 = vadd.f32 -2.117904, %v464_v10  ;;  %v558_v13 = vmul.f32 4.4642854, %v542_v11  ;;  %v712_v10 = vmin.f32 %v1175_v41, 45.0 }
 0x146   :  { %v480_v14 = vsel %vm310_vm1, %v472_v12, -0.165682  ;;  %v566_v15 = vadd.f32 -2.0357141, %v558_v13  ;;  %v713_v13 = vmin.f32 %v1175_v41, 38.0 }
 0x147   :  { %488 = vst [vmem:[#allocation8 + $0x10] sm:$0xff] %v480_v14  ;;  %v714_v14 = vmul.f32 1.6842105, %v711_v9 }
 0x148   :  { %v574_v16 = vsel %vm310_vm1, %v566_v15, -0.039915983 }
 0x149   :  { %583 = vst [vmem:[#allocation8 + $0x58] sm:$0xff] %v574_v16  ;;  %v449_v17 = vpop.f32.mrf.mxu3 }
 0x14a   :  { %v465_v18 = vmul.f32 4.366812, %v449_v17  ;;  %v715_v17 = vmul.f32 1.6842105, %v712_v10 }
 0x14b   :  { %v545_v19 = vpop.f32.mrf.mxu0 }
 0x14c   :  { %v473_v20 = vadd.f32 -2.117904, %v465_v18  ;;  %v559_v21 = vmul.f32 4.4642854, %v545_v19 }
 0x14e   :  { %v481_v22 = vsel %vm310_vm1, %v473_v20, -0.165682  ;;  %v567_v23 = vadd.f32 -2.0357141, %v559_v21  ;;  %v716_v20 = vmul.f32 1.6842105, %v713_v13 }
 0x14f   :  { %489 = vst [vmem:[#allocation8 + $0x18] sm:$0xff] %v481_v22  ;;  %v1080_v21 = vmov 0.0  }
 0x150   :  { %v575_v24 = vsel %vm310_vm1, %v567_v23, -0.039915983  ;;  %v629_v25 = vpop.f32.mrf.mxu1  ;;  %v915_v22 = vsel %vm710_vm2, 1.0, %v1080_v21 }
 0x151   :  { %584 = vst [vmem:[#allocation8 + $0x60] sm:$0xff] %v575_v24  ;;  %v452_v26 = vpop.f32.mrf.mxu3  ;;  %v649_v27 = vmul.f32 4.4444447, %v629_v25  ;;  %v720_v24 = vrot.slane %v915_v22, 4  ;;  %v723_v25 = vsel %vm722_vm3, %v714_v14, %v715_v17 }
 0x152   :  { %v466_v28 = vmul.f32 4.366812, %v452_v26 }
 0x153   :  { %v657_v29 = vadd.f32 -1.8044444, %v649_v27  ;;  %v547_v30 = vpop.f32.mrf.mxu0  ;;  %v725_v27 = vsel %vm724_vm4, %v723_v25, %v716_v20 }
 0x154   :  { %v474_v31 = vadd.f32 -2.117904, %v466_v28  ;;  %v560_v32 = vmul.f32 4.4642854, %v547_v30 }
 0x155   :  { %v665_v33 = vsel %vm310_vm1, %v657_v29, 0.18248376  ;;  %v727_v29 = vsel %vm726_vm5, %v725_v27, %v720_v24 }
 0x156   :  { %v482_v34 = vsel %vm310_vm1, %v474_v31, -0.165682  ;;  %674 = vst [vmem:[#allocation8 + $0x80] sm:$0xff] %v665_v33  ;;  %v568_v35 = vadd.f32 -2.0357141, %v560_v32  ;;  %v729_v31 = vsel %vm728_vm6, %v727_v29, 0.0 }
 0x157   :  { %490 = vst [vmem:[#allocation8 + $0x20] sm:$0xff] %v482_v34  ;;  %v731_v33 = vsel %vm730_vm7, %v729_v31, 0.0 }
 0x158   :  { %v576_v36 = vsel %vm310_vm1, %v568_v35, -0.039915983  ;;  %v631_v37 = vpop.f32.mrf.mxu1  ;;  %v733_v34 = vsel %vm732_vm8, %v731_v33, 0.0 }
 0x159   :  { %585 = vst [vmem:[#allocation8 + $0x68] sm:$0xff] %v576_v36  ;;  %v454_v38 = vpop.f32.mrf.mxu3  ;;  %v650_v39 = vmul.f32 4.4444447, %v631_v37 }
 0x15a   :  { %v467_v40 = vmul.f32 4.366812, %v454_v38  ;;  %734 = vst [vmem:[#allocation9] sm:$0xff] %v733_v34 }
 0x15b   :  { %v658_v42 = vadd.f32 -1.8044444, %v650_v39  ;;  %v550_v43 = vpop.f32.mrf.mxu0  ;;  %758 = dma.vmem_to_hbm [thread:$0]  %s754_s14, 128, %s756_s17, [#allocation10]  }
 0x15c   :  { %v475_v44 = vadd.f32 -2.117904, %v467_v40  ;;  %v561_v45 = vmul.f32 4.4642854, %v550_v43 }
 0x15d   :  { %v666_v48 = vsel %vm310_vm1, %v658_v42, 0.18248376 }
 0x15e   :  { %v483_v51 = vsel %vm310_vm1, %v475_v44, -0.165682  ;;  %675 = vst [vmem:[#allocation8 + $0x88] sm:$0xff] %v666_v48  ;;  %v569_v53 = vadd.f32 -2.0357141, %v561_v45 }
 0x15f   :  { %491 = vst [vmem:[#allocation8 + $0x28] sm:$0xff] %v483_v51 }
 0x160   :  { %v577_v56 = vsel %vm310_vm1, %v569_v53, -0.039915983  ;;  %v634_v57 = vpop.f32.mrf.mxu1 }
 0x161   :  { %586 = vst [vmem:[#allocation8 + $0x70] sm:$0xff] %v577_v56  ;;  %v457_v60 = vpop.f32.mrf.mxu3  ;;  %v651_v61 = vmul.f32 4.4444447, %v634_v57 }
 0x162   :  { %v468_v63 = vmul.f32 4.366812, %v457_v60 }
 0x163   :  { %v659_v1 = vadd.f32 -1.8044444, %v651_v61  ;;  %v552_v2 = vpop.f32.mrf.mxu0 }
 0x164   :  { %v476_v4 = vadd.f32 -2.117904, %v468_v63  ;;  %v562_v5 = vmul.f32 4.4642854, %v552_v2 }
 0x165   :  { %v667_v7 = vsel %vm310_vm1, %v659_v1, 0.18248376 }
 0x166   :  { %v484_v11 = vsel %vm310_vm1, %v476_v4, -0.165682  ;;  %676 = vst [vmem:[#allocation8 + $0x90] sm:$0xff] %v667_v7  ;;  %v570_v12 = vadd.f32 -2.0357141, %v562_v5 }
 0x167   :  { %492 = vst [vmem:[#allocation8 + $0x30] sm:$0xff] %v484_v11 }
 0x168   :  { %v578_v15 = vsel %vm310_vm1, %v570_v12, -0.039915983  ;;  %v636_v16 = vpop.f32.mrf.mxu1 }
 0x169   :  { %587 = vst [vmem:[#allocation8 + $0x78] sm:$0xff] %v578_v15  ;;  %v459_v18 = vpop.f32.mrf.mxu3  ;;  %v652_v19 = vmul.f32 4.4444447, %v636_v16 }
 0x16a   :  { %v469_v23 = vmul.f32 4.366812, %v459_v18 }
 0x16b   :  { %v660_v26 = vadd.f32 -1.8044444, %v652_v19 }
 0x16c   :  { %v477_v28 = vadd.f32 -2.117904, %v469_v23 }
 0x16d   :  { %v668_v30 = vsel %vm310_vm1, %v660_v26, 0.18248376 }
 0x16e   :  { %v485_v32 = vsel %vm310_vm1, %v477_v28, -0.165682  ;;  %677 = vst [vmem:[#allocation8 + $0x98] sm:$0xff] %v668_v30 }
 0x16f   :  { %493 = vst [vmem:[#allocation8 + $0x38] sm:$0xff] %v485_v32 }
 0x170   :  { %v639_v35 = vpop.f32.mrf.mxu1 }
 0x171   :  { %v653_v36 = vmul.f32 4.4444447, %v639_v35 }
 0x173   :  { %v661_v37 = vadd.f32 -1.8044444, %v653_v36 }
 0x175   :  { %v669_v38 = vsel %vm310_vm1, %v661_v37, 0.18248376 }
 0x176   :  { %678 = vst [vmem:[#allocation8 + $0xa0] sm:$0xff] %v669_v38 }
 0x178   :  { %v641_v39 = vpop.f32.mrf.mxu1 }
 0x179   :  { %v654_v40 = vmul.f32 4.4444447, %v641_v39 }
 0x17b   :  { %v662_v41 = vadd.f32 -1.8044444, %v654_v40 }
 0x17d   :  { %v670_v42 = vsel %vm310_vm1, %v662_v41, 0.18248376 }
 0x17e   :  { %679 = vst [vmem:[#allocation8 + $0xa8] sm:$0xff] %v670_v42 }
 0x180   :  { %v644_v43 = vpop.f32.mrf.mxu1 }
 0x181   :  { %v655_v44 = vmul.f32 4.4444447, %v644_v43 }
 0x183   :  { %v663_v45 = vadd.f32 -1.8044444, %v655_v44 }
 0x185   :  { %v671_v46 = vsel %vm310_vm1, %v663_v45, 0.18248376 }
 0x186   :  { %680 = vst [vmem:[#allocation8 + $0xb0] sm:$0xff] %v671_v46 }
 0x188   :  { %v646_v47 = vpop.f32.mrf.mxu1 }
 0x189   :  { %v656_v48 = vmul.f32 4.4444447, %v646_v47 }
 0x18b   :  { %v664_v49 = vadd.f32 -1.8044444, %v656_v48 }
 0x18d   :  { %v672_v50 = vsel %vm310_vm1, %v664_v49, 0.18248376 }
 0x18e   :  { %681 = vst [vmem:[#allocation8 + $0xb8] sm:$0xff] %v672_v50 }
 0x18f   :  { %747 = dma.vmem_to_hbm [thread:$0]  %s740_s18, 3072, %s742_s21, [#allocation5], %s1083_s22, %s1083_s22, %s1084_s23  }
 0x190   :  { %1068 = dma.done.wait [#allocation5], 3072  }
 0x191   :  { %1069 = vsyncadd [#allocation5], 4294964224 }
 0x192   :  { %1070 = dma.done.wait [#allocation10], 128  }
 0x193   :  { %1071 = vsyncadd [#allocation10], 4294967168 }
 0x194   :  { %767 = vsyncpa [#allocation4], 1 }
 0x195   :  { %768 = vsyncpa [#allocation7], 1 }
 0x196   :  { %769 = vsyncpa [#allocation5], 1 }
 0x197   :  { %770 = vsyncpa [#allocation10], 1 }

</bundles_post_ra>
